<compile_context>
chip_gen: v5e
topology: v5e:2x2
jax: 0.10.0
libtpu: 0.0.40
codegen_flags: <defaults>
</compile_context>

<pallas_src>
import functools

import jax
import jax.numpy as jnp
from jax.experimental import pallas as pl
from jax.experimental.pallas import tpu as pltpu

ACC_DTYPE = jnp.float32
PARAM_DTYPE = jnp.bfloat16


def _round_up(x, m):
    return ((x + m - 1) // m) * m


def _pick_tile(full, target, align):
    """Largest multiple of `align` <= target that divides `full`; else the full axis."""
    if full <= target:
        return full
    t = (target // align) * align
    while t >= align:
        if full % t == 0:
            return t
        t -= align
    return full


def _hardware_config():
    """Per-generation tile sizes / VMEM limits / elementwise dtype."""
    try:
        kind = jax.devices()[0].device_kind.lower()
    except Exception:  # pragma: no cover - CPU / interpret fallbacks
        kind = ""
    mib = 1024 * 1024
    if "v7" in kind:   # 64 MiB VMEM per TC, 3.2 TB/s HBM, bf16/fp8 MXU
        return dict(ffn_tm=512, ffn_tn=256, out_tm=512, out_tn=256,
                    vmem_limit=56 * mib, silu_dtype=jnp.bfloat16)
    if "v6" in kind:   # 128 MiB VMEM, highest compute/BW ratio -> biggest tiles
        return dict(ffn_tm=1024, ffn_tn=512, out_tm=1024, out_tn=512,
                    vmem_limit=100 * mib, silu_dtype=jnp.bfloat16)
    if "v5" in kind:   # 128 MiB VMEM, no bf16 VPU/EUP -> f32 elementwise
        return dict(ffn_tm=512, ffn_tn=512, out_tm=512, out_tn=512,
                    vmem_limit=96 * mib, silu_dtype=jnp.float32)
    return dict(ffn_tm=512, ffn_tn=256, out_tm=512, out_tn=256,
                vmem_limit=48 * mib, silu_dtype=jnp.bfloat16)


# ---------------------------------------------------------------------------
# Fused SwiGLU feed-forward:  w2( silu(x@w1+b1) * (x@w3+b3) ) + b2
# grid = (M/tm, H/tn); the hidden axis is the reduction axis (f32 accumulator).
# ---------------------------------------------------------------------------
def _ffn_kernel(x_ref, w1_ref, b1_ref, w3_ref, b3_ref, w2_ref, b2_ref,
                o_ref, acc_ref, *, tn, silu_dtype):
    n = pl.program_id(1)

    @pl.when(n == 0)
    def _():
        acc_ref[...] = jnp.zeros_like(acc_ref)

    x = x_ref[...]
    off = pl.multiple_of(n * tn, tn)
    b1 = b1_ref[:, pl.ds(off, tn)].astype(ACC_DTYPE)
    b3 = b3_ref[:, pl.ds(off, tn)].astype(ACC_DTYPE)
    h1 = jnp.dot(x, w1_ref[...], preferred_element_type=ACC_DTYPE) + b1
    h3 = jnp.dot(x, w3_ref[...], preferred_element_type=ACC_DTYPE) + b3
    h = (jax.nn.silu(h1.astype(silu_dtype)) * h3.astype(silu_dtype)).astype(w2_ref.dtype)
    acc_ref[...] += jnp.dot(h, w2_ref[...], preferred_element_type=ACC_DTYPE)

    @pl.when(n == pl.num_programs(1) - 1)
    def _():
        o_ref[...] = (acc_ref[...] + b2_ref[...].astype(ACC_DTYPE)).astype(o_ref.dtype)


def feed_forward(x, w1, b1, w3, b3, w2, b2, *, cfg):
    M, D = x.shape
    H = w1.shape[1]
    tm = min(cfg["ffn_tm"], _round_up(M, 8))
    tn = min(cfg["ffn_tn"], _round_up(H, 128))
    m_pad = _round_up(M, tm)
    h_pad = _round_up(H, tn)
    if m_pad != M:
        x = jnp.pad(x, ((0, m_pad - M), (0, 0)))
    if h_pad != H:
        # Zero-padded hidden units contribute exactly 0 through silu(.)*(.) @ w2.
        dh = h_pad - H
        w1 = jnp.pad(w1, ((0, 0), (0, dh)))
        b1 = jnp.pad(b1, ((0, 0), (0, dh)))
        w3 = jnp.pad(w3, ((0, 0), (0, dh)))
        b3 = jnp.pad(b3, ((0, 0), (0, dh)))
        w2 = jnp.pad(w2, ((0, dh), (0, 0)))

    grid = (m_pad // tm, h_pad // tn)
    out = pl.pallas_call(
        functools.partial(_ffn_kernel, tn=tn, silu_dtype=cfg["silu_dtype"]),
        out_shape=jax.ShapeDtypeStruct((m_pad, D), x.dtype),
        grid_spec=pltpu.PrefetchScalarGridSpec(
            num_scalar_prefetch=0,
            grid=grid,
            in_specs=[
                pl.BlockSpec((tm, D), lambda i, n: (i, 0)),      # x, resident across n
                pl.BlockSpec((D, tn), lambda i, n: (0, n)),      # w1 tile
                pl.BlockSpec((1, h_pad), lambda i, n: (0, 0)),   # b1, full-resident
                pl.BlockSpec((D, tn), lambda i, n: (0, n)),      # w3 tile
                pl.BlockSpec((1, h_pad), lambda i, n: (0, 0)),   # b3, full-resident
                pl.BlockSpec((tn, D), lambda i, n: (n, 0)),      # w2 tile
                pl.BlockSpec((1, D), lambda i, n: (0, 0)),       # b2 (epilogue only)
            ],
            out_specs=pl.BlockSpec((tm, D), lambda i, n: (i, 0)),
            scratch_shapes=[pltpu.VMEM((tm, D), ACC_DTYPE)],
        ),
        compiler_params=pltpu.CompilerParams(
            dimension_semantics=("parallel", "arbitrary"),
            vmem_limit_bytes=cfg["vmem_limit"],
        ),
    )(x, w1, b1, w3, b3, w2, b2)
    return out[:M] if m_pad != M else out


# ---------------------------------------------------------------------------
# RMSNorm (f32) + output linear.  grid = (M/tm, Dout/tn_out); the output weight
# is tiled along its output dim; the normalized x tile is computed once per M
# tile (pl.when(j == 0)) into a VMEM scratch and reused across all wo tiles.
# ---------------------------------------------------------------------------
def _norm_output_kernel(x_ref, g_ref, wo_ref, o_ref, xn_ref, *, eps):
    @pl.when(pl.program_id(1) == 0)
    def _():
        x32 = x_ref[...].astype(jnp.float32)
        ms = jnp.mean(x32 * x32, axis=-1, keepdims=True)
        xn = (x32 * jax.lax.rsqrt(ms + eps)).astype(x_ref.dtype)
        xn_ref[...] = xn * g_ref[...]
    o_ref[...] = jnp.dot(xn_ref[...], wo_ref[...],
                         preferred_element_type=jnp.float32).astype(o_ref.dtype)


def norm_and_output(x, gamma, w_out, eps, *, cfg):
    M, D = x.shape
    d_out = w_out.shape[1]
    tm = min(cfg["out_tm"], _round_up(M, 8))
    tn = _pick_tile(d_out, cfg["out_tn"], 128)
    m_pad = _round_up(M, tm)
    if m_pad != M:
        x = jnp.pad(x, ((0, m_pad - M), (0, 0)))

    grid = (m_pad // tm, d_out // tn)
    out = pl.pallas_call(
        functools.partial(_norm_output_kernel, eps=eps),
        out_shape=jax.ShapeDtypeStruct((m_pad, d_out), x.dtype),
        grid_spec=pltpu.PrefetchScalarGridSpec(
            num_scalar_prefetch=0,
            grid=grid,
            in_specs=[
                pl.BlockSpec((tm, D), lambda i, j: (i, 0)),   # x, resident across j
                pl.BlockSpec((1, D), lambda i, j: (0, 0)),    # gamma
                pl.BlockSpec((D, tn), lambda i, j: (0, j)),   # output-weight tile
            ],
            out_specs=pl.BlockSpec((tm, tn), lambda i, j: (i, j)),
            scratch_shapes=[pltpu.VMEM((tm, D), x.dtype)],    # normalized x tile
        ),
        compiler_params=pltpu.CompilerParams(
            dimension_semantics=("parallel", "arbitrary"),
            vmem_limit_bytes=cfg["vmem_limit"],
        ),
    )(x, gamma, w_out)
    return out[:M] if m_pad != M else out


# ---------------------------------------------------------------------------
# Model (parameter setup + glue in plain JAX, hot path in Pallas)
# ---------------------------------------------------------------------------
def init_params(key, vocab_size, dim, n_layers, dtype=PARAM_DTYPE):
    hidden_dim = 4 * dim
    keys = jax.random.split(key, 2 + 6 * n_layers)
    scale = 0.02
    params = {
        "tok_embeddings": (scale * jax.random.normal(keys[0], (vocab_size, dim))).astype(dtype),
        "norm_weight": jnp.ones((1, dim), dtype),
        "output": (scale * jax.random.normal(keys[1], (dim, dim))).astype(dtype),
        "layers": [],
    }
    k = 2
    for _ in range(n_layers):
        layer = {
            "w1": (scale * jax.random.normal(keys[k + 0], (dim, hidden_dim))).astype(dtype),
            "b1": (scale * jax.random.normal(keys[k + 1], (1, hidden_dim))).astype(dtype),
            "w3": (scale * jax.random.normal(keys[k + 2], (dim, hidden_dim))).astype(dtype),
            "b3": (scale * jax.random.normal(keys[k + 3], (1, hidden_dim))).astype(dtype),
            "w2": (scale * jax.random.normal(keys[k + 4], (hidden_dim, dim))).astype(dtype),
            "b2": (scale * jax.random.normal(keys[k + 5], (1, dim))).astype(dtype),
        }
        params["layers"].append(layer)
        k += 6
    return params


def mlp_forward(params, tokens, eps=1e-6):
    cfg = _hardware_config()
    B, S = tokens.shape
    D = params["tok_embeddings"].shape[1]
    M = B * S
    # Embedding lookup is a gather (glue); the matmul / elementwise hot path is Pallas.
    h = jnp.take(params["tok_embeddings"], tokens.reshape(-1), axis=0)  # [M, D]

    # Pad the token axis once so no per-layer pad/slice is needed; the padded (zero)
    # rows are independent and sliced off at the end.
    tm = min(cfg["ffn_tm"], _round_up(M, 8))
    m_pad = _round_up(M, tm)
    if m_pad != M:
        h = jnp.pad(h, ((0, m_pad - M), (0, 0)))

    for layer in params["layers"]:
        h = feed_forward(h, layer["w1"], layer["b1"], layer["w3"],
                         layer["b3"], layer["w2"], layer["b2"], cfg=cfg)
    out = norm_and_output(h, params["norm_weight"], params["output"], eps, cfg=cfg)
    return out[:M].reshape(B, S, D)


def mlp_forward_ref(params, tokens, eps=1e-6):
    """Pure-JAX reference mirroring the kernel's cast points."""
    cfg = _hardware_config()
    silu_dtype = cfg["silu_dtype"]
    h = jnp.take(params["tok_embeddings"], tokens.reshape(-1), axis=0)
    for layer in params["layers"]:
        h1 = jnp.dot(h, layer["w1"], preferred_element_type=jnp.float32) \
            + layer["b1"].astype(jnp.float32)
        h3 = jnp.dot(h, layer["w3"], preferred_element_type=jnp.float32) \
            + layer["b3"].astype(jnp.float32)
        g = (jax.nn.silu(h1.astype(silu_dtype)) * h3.astype(silu_dtype)).astype(layer["w2"].dtype)
        h = (jnp.dot(g, layer["w2"], preferred_element_type=jnp.float32)
             + layer["b2"].astype(jnp.float32)).astype(h.dtype)
    x32 = h.astype(jnp.float32)
    xn = (x32 * jax.lax.rsqrt(jnp.mean(x32 * x32, -1, keepdims=True) + eps)).astype(h.dtype)
    hn = xn * params["norm_weight"]
    out = jnp.dot(hn, params["output"], preferred_element_type=jnp.float32).astype(h.dtype)
    return out.reshape(tokens.shape[0], tokens.shape[1], -1)


if __name__ == "__main__":
    vocab_size, dim, n_layers = 64, 32, 2
    batch, seq = 2, 8

    key = jax.random.PRNGKey(0)
    pkey, tkey = jax.random.split(key)
    params = init_params(pkey, vocab_size, dim, n_layers)
    tokens = jax.random.randint(tkey, (batch, seq), 0, vocab_size, dtype=jnp.int32)

    out = mlp_forward(params, tokens)
    out = jax.block_until_ready(out)

    ref = mlp_forward_ref(params, tokens)
    assert out.shape == (batch, seq, dim)
    assert jnp.allclose(out.astype(jnp.float32), ref.astype(jnp.float32),
                        atol=2e-2, rtol=2e-2)

    print("KERNEL_OK")
</pallas_src>

<mosaic_0001>
module attributes {stable_mosaic.version = 11 : i64} {
  func.func @_ffn_kernel(%arg0: i32, %arg1: i32, %arg2: memref<16x32xbf16, #tpu.memory_space<vmem>>, %arg3: memref<32x128xbf16, #tpu.memory_space<vmem>>, %arg4: memref<1x128xbf16, #tpu.memory_space<vmem>>, %arg5: memref<32x128xbf16, #tpu.memory_space<vmem>>, %arg6: memref<1x128xbf16, #tpu.memory_space<vmem>>, %arg7: memref<128x32xbf16, #tpu.memory_space<vmem>>, %arg8: memref<1x32xbf16, #tpu.memory_space<vmem>>, %arg9: memref<16x32xbf16, #tpu.memory_space<vmem>>, %arg10: memref<16x32xf32, #tpu.memory_space<vmem>>) attributes {dimension_semantics = [#tpu.dimension_semantics<parallel>, #tpu.dimension_semantics<arbitrary>], iteration_bounds = array<i64: 1, 1>, scalar_prefetch = 0 : i64, scratch_operands = 1 : i64, tpu.core_type = #tpu.core_type<tc>, window_params = [{transform_indices = @transform_0, window_bounds = array<i64: 16, 32>}, {transform_indices = @transform_1, window_bounds = array<i64: 32, 128>}, {pipeline_mode = #tpu.pipeline_mode<synchronous>, transform_indices = @transform_2, window_bounds = array<i64: 1, 128>}, {transform_indices = @transform_3, window_bounds = array<i64: 32, 128>}, {pipeline_mode = #tpu.pipeline_mode<synchronous>, transform_indices = @transform_4, window_bounds = array<i64: 1, 128>}, {transform_indices = @transform_5, window_bounds = array<i64: 128, 32>}, {pipeline_mode = #tpu.pipeline_mode<synchronous>, transform_indices = @transform_6, window_bounds = array<i64: 1, 32>}, {transform_indices = @transform_7, window_bounds = array<i64: 16, 32>}]} {
    %c0_i32 = arith.constant 0 : i32
    %0 = arith.cmpi eq, %arg1, %c0_i32 : i32
    %1 = arith.extui %0 : i1 to i32
    %c0_i32_0 = arith.constant 0 : i32
    %2 = arith.cmpi ne, %1, %c0_i32_0 : i32
    scf.if %2 {
      %cst_19 = arith.constant 0.000000e+00 : f32
      %37 = vector.broadcast %cst_19 : f32 to vector<16x32xf32>
      %c0_20 = arith.constant 0 : index
      %c0_21 = arith.constant 0 : index
      %38 = vector.load %arg10[%c0_20, %c0_21] : memref<16x32xf32, #tpu.memory_space<vmem>>, vector<16x32xf32>
      tpu.vector_store %arg10[%c0_20, %c0_21], %37 {strides = array<i32>} : memref<16x32xf32, #tpu.memory_space<vmem>>, vector<16x32xf32>,
    } else {
    }
    %c0 = arith.constant 0 : index
    %c0_1 = arith.constant 0 : index
    %3 = vector.load %arg2[%c0, %c0_1] : memref<16x32xbf16, #tpu.memory_space<vmem>>, vector<16x32xbf16>
    %c128_i32 = arith.constant 128 : i32
    %4 = arith.muli %arg1, %c128_i32 : i32
    %5 = tpu.assume_multiple %4, 128 : i32
    %c0_2 = arith.constant 0 : index
    %6 = arith.index_cast %5 : i32 to index
    %7 = vector.load %arg4[%c0_2, %6] : memref<1x128xbf16, #tpu.memory_space<vmem>>, vector<1x128xbf16>
    %8 = arith.extf %7 : vector<1x128xbf16> to vector<1x128xf32>
    %c0_3 = arith.constant 0 : index
    %9 = arith.index_cast %5 : i32 to index
    %10 = vector.load %arg6[%c0_3, %9] : memref<1x128xbf16, #tpu.memory_space<vmem>>, vector<1x128xbf16>
    %11 = arith.extf %10 : vector<1x128xbf16> to vector<1x128xf32>
    %c0_4 = arith.constant 0 : index
    %c0_5 = arith.constant 0 : index
    %12 = vector.load %arg3[%c0_4, %c0_5] : memref<32x128xbf16, #tpu.memory_space<vmem>>, vector<32x128xbf16>
    %cst = arith.constant dense<0.000000e+00> : vector<16x128xf32>
    %13 = tpu.matmul %3, %12, %cst {dimension_numbers = #tpu.dot_dimension_numbers<[1], [0], [0], [1], [0, 0, 1, 1], [], []>} : vector<16x32xbf16>, vector<32x128xbf16>, vector<16x128xf32> -> vector<16x128xf32>
    %14 = vector.broadcast %8 : vector<1x128xf32> to vector<16x128xf32>
    %15 = arith.addf %13, %14 : vector<16x128xf32>
    %c0_6 = arith.constant 0 : index
    %c0_7 = arith.constant 0 : index
    %16 = vector.load %arg5[%c0_6, %c0_7] : memref<32x128xbf16, #tpu.memory_space<vmem>>, vector<32x128xbf16>
    %cst_8 = arith.constant dense<0.000000e+00> : vector<16x128xf32>
    %17 = tpu.matmul %3, %16, %cst_8 {dimension_numbers = #tpu.dot_dimension_numbers<[1], [0], [0], [1], [0, 0, 1, 1], [], []>} : vector<16x32xbf16>, vector<32x128xbf16>, vector<16x128xf32> -> vector<16x128xf32>
    %18 = vector.broadcast %11 : vector<1x128xf32> to vector<16x128xf32>
    %19 = arith.addf %17, %18 : vector<16x128xf32>
    %20 = arith.truncf %15 : vector<16x128xf32> to vector<16x128xbf16>
    %21 = arith.negf %20 : vector<16x128xbf16>
    %22 = math.exp %21 : vector<16x128xbf16>
    %cst_9 = arith.constant 1.000000e+00 : bf16
    %23 = vector.broadcast %cst_9 : bf16 to vector<16x128xbf16>
    %24 = arith.addf %23, %22 : vector<16x128xbf16>
    %25 = arith.divf %23, %24 : vector<16x128xbf16>
    %26 = arith.mulf %20, %25 : vector<16x128xbf16>
    %27 = arith.truncf %19 : vector<16x128xf32> to vector<16x128xbf16>
    %28 = arith.mulf %26, %27 : vector<16x128xbf16>
    %c0_10 = arith.constant 0 : index
    %c0_11 = arith.constant 0 : index
    %29 = vector.load %arg10[%c0_10, %c0_11] : memref<16x32xf32, #tpu.memory_space<vmem>>, vector<16x32xf32>
    %c0_12 = arith.constant 0 : index
    %c0_13 = arith.constant 0 : index
    %30 = vector.load %arg7[%c0_12, %c0_13] : memref<128x32xbf16, #tpu.memory_space<vmem>>, vector<128x32xbf16>
    %cst_14 = arith.constant dense<0.000000e+00> : vector<16x32xf32>
    %31 = tpu.matmul %28, %30, %cst_14 {dimension_numbers = #tpu.dot_dimension_numbers<[1], [0], [0], [1], [0, 0, 1, 1], [], []>} : vector<16x128xbf16>, vector<128x32xbf16>, vector<16x32xf32> -> vector<16x32xf32>
    %32 = arith.addf %29, %31 : vector<16x32xf32>
    %c0_15 = arith.constant 0 : index
    %c0_16 = arith.constant 0 : index
    %33 = vector.load %arg10[%c0_15, %c0_16] : memref<16x32xf32, #tpu.memory_space<vmem>>, vector<16x32xf32>
    tpu.vector_store %arg10[%c0_15, %c0_16], %32 {strides = array<i32>} : memref<16x32xf32, #tpu.memory_space<vmem>>, vector<16x32xf32>,
    %c0_i32_17 = arith.constant 0 : i32
    %34 = arith.cmpi eq, %arg1, %c0_i32_17 : i32
    %35 = arith.extui %34 : i1 to i32
    %c0_i32_18 = arith.constant 0 : i32
    %36 = arith.cmpi ne, %35, %c0_i32_18 : i32
    scf.if %36 {
      %c0_19 = arith.constant 0 : index
      %c0_20 = arith.constant 0 : index
      %37 = vector.load %arg10[%c0_19, %c0_20] : memref<16x32xf32, #tpu.memory_space<vmem>>, vector<16x32xf32>
      %c0_21 = arith.constant 0 : index
      %c0_22 = arith.constant 0 : index
      %38 = vector.load %arg8[%c0_21, %c0_22] : memref<1x32xbf16, #tpu.memory_space<vmem>>, vector<1x32xbf16>
      %39 = arith.extf %38 : vector<1x32xbf16> to vector<1x32xf32>
      %40 = vector.broadcast %39 : vector<1x32xf32> to vector<16x32xf32>
      %41 = arith.addf %37, %40 : vector<16x32xf32>
      %42 = arith.truncf %41 : vector<16x32xf32> to vector<16x32xbf16>
      %c0_23 = arith.constant 0 : index
      %c0_24 = arith.constant 0 : index
      %43 = vector.load %arg9[%c0_23, %c0_24] : memref<16x32xbf16, #tpu.memory_space<vmem>>, vector<16x32xbf16>
      tpu.vector_store %arg9[%c0_23, %c0_24], %42 {strides = array<i32>} : memref<16x32xbf16, #tpu.memory_space<vmem>>, vector<16x32xbf16>,
    } else {
    }
    return
  }
  func.func @transform_0(%arg0: i32, %arg1: i32) -> (i32, i32) {
    %c0_i32 = arith.constant 0 : i32
    %c0_i32_0 = arith.constant 0 : i32
    return %arg0, %c0_i32 : i32, i32
  }
  func.func @transform_1(%arg0: i32, %arg1: i32) -> (i32, i32) {
    %c0_i32 = arith.constant 0 : i32
    %c0_i32_0 = arith.constant 0 : i32
    return %c0_i32, %arg1 : i32, i32
  }
  func.func @transform_2(%arg0: i32, %arg1: i32) -> (i32, i32) {
    %c0_i32 = arith.constant 0 : i32
    %c0_i32_0 = arith.constant 0 : i32
    %c0_i32_1 = arith.constant 0 : i32
    return %c0_i32, %c0_i32_0 : i32, i32
  }
  func.func @transform_3(%arg0: i32, %arg1: i32) -> (i32, i32) {
    %c0_i32 = arith.constant 0 : i32
    %c0_i32_0 = arith.constant 0 : i32
    return %c0_i32, %arg1 : i32, i32
  }
  func.func @transform_4(%arg0: i32, %arg1: i32) -> (i32, i32) {
    %c0_i32 = arith.constant 0 : i32
    %c0_i32_0 = arith.constant 0 : i32
    %c0_i32_1 = arith.constant 0 : i32
    return %c0_i32, %c0_i32_0 : i32, i32
  }
  func.func @transform_5(%arg0: i32, %arg1: i32) -> (i32, i32) {
    %c0_i32 = arith.constant 0 : i32
    %c0_i32_0 = arith.constant 0 : i32
    return %arg1, %c0_i32 : i32, i32
  }
  func.func @transform_6(%arg0: i32, %arg1: i32) -> (i32, i32) {
    %c0_i32 = arith.constant 0 : i32
    %c0_i32_0 = arith.constant 0 : i32
    %c0_i32_1 = arith.constant 0 : i32
    return %c0_i32, %c0_i32_0 : i32, i32
  }
  func.func @transform_7(%arg0: i32, %arg1: i32) -> (i32, i32) {
    %c0_i32 = arith.constant 0 : i32
    %c0_i32_0 = arith.constant 0 : i32
    return %arg0, %c0_i32 : i32, i32
  }
}

</mosaic_0001>

<bundles_post_ra>
// kernel: tpu_custom_call.1
= control target key start
LH: loop header
LB: loop body
LE: loop exit
PB: predicated region body
PF: predicated region fallthrough
CT: control target
= control target key end

     0   :  { %s504_s0 = inlined_call_operand.vmem [shape: bf16[16,32], index: 0, kind: input, shape index: {}]   ;;  %s505_s1 = inlined_call_operand.vmem [shape: bf16[32,128], index: 1, kind: input, shape index: {}]   ;;  %s506_s2 = inlined_call_operand.vmem [shape: bf16[1,128], index: 2, kind: input, shape index: {}]   ;;  %s507_s3 = inlined_call_operand.vmem [shape: bf16[32,128], index: 3, kind: input, shape index: {}]   ;;  %s508_s4 = inlined_call_operand.vmem [shape: bf16[1,128], index: 4, kind: input, shape index: {}]   ;;  %s509_s5 = inlined_call_operand.vmem [shape: bf16[128,32], index: 5, kind: input, shape index: {}]   ;;  %s510_s6 = inlined_call_operand.vmem [shape: bf16[1,32], index: 6, kind: input, shape index: {}]   ;;  %s511_s7 = inlined_call_operand.hbm [shape: bf16[16,32], index: 7, kind: output, shape index: {}]  }
   0x1   :  { %v344_v0 = vld [vmem:[%s505_s1 + $0x8] sm:$0xff]  ;;  %v343_v2 = vld [vmem:[%s505_s1] sm:$0xff] }
   0x2   :  { %v346_v1 = vld [vmem:[%s507_s3 + $0x8] sm:$0xff]  ;;  %79 = vmatpush.bf16.msra.mxu0 %v344_v0 }
   0x3   :  { %12 = vsyncpa [#allocation4], 0  ;;  %110 = vmatpush.bf16.msra.mxu1 %v346_v1  ;;  %v345_v3 = vld [vmem:[%s507_s3] sm:$0xff]  ;;  %vm33_vm0 = vcmask 261120   ;;  %v354_v7 = vld [vmem:[%s509_s5 + $0x38] sm:$0xff]  ;;  %v398_v38 = vmov 0.0  }
   0x4   :  { %v342_v4 = vld [vmem:[%s504_s0] sm:$0xff]  ;;  %235 = vmatpush.bf16.msra.mxu2 %v354_v7  ;;  %v353_v9 = vld [vmem:[%s509_s5 + $0x30] sm:$0xff]  ;;  %v352_v13 = vld [vmem:[%s509_s5 + $0x28] sm:$0xff]  ;;  %34 = vst.msk [vmem:[#allocation2] sm:$0xff] %vm33_vm0, %v398_v38  ;;  %v399_v40 = vmov 1065369472  }
   0x5   :  { %v42_v5 = vld [vmem:[%s506_s2] sm:$0x1]  ;;  %v350_v21 = vld [vmem:[%s509_s5 + $0x18] sm:$0xff]  ;;  %v349_v24 = vld [vmem:[%s509_s5 + $0x10] sm:$0xff]  ;;  %35 = vst.msk [vmem:[#allocation2 + $0x8] sm:$0xff] %vm33_vm0, %v398_v38  ;;  %v136_v41 = vunpack.c.h.bf16 %v399_v40  ;;  %v137_v42 = vunpack.c.l.bf16 %v399_v40  ;;  %vm265_vm1 = vcmask 257024  }
   0x6   :  { %80 = vmatpush.bf16.msra.mxu0 %v343_v2  ;;  %v43_v6 = vunpack.c.l.bf16 %v42_v5  ;;  %v351_v16 = vld [vmem:[%s509_s5 + $0x20] sm:$0xff]  ;;  %v348_v28 = vld [vmem:[%s509_s5 + $0x8] sm:$0xff]  ;;  %s400_s27 = smov [#allocation3]   ;;  %s401_s8 = smov 64  }
   0x7   :  { %111 = vmatpush.bf16.msra.mxu1 %v345_v3  ;;  %v347_v30 = vld [vmem:[%s509_s5] sm:$0xff]  ;;  %s272_s28 = sshll.u32 %s400_s27, 4  ;;  %s402_s9 = smov 4   ;;  %s273_s28 = int_to_ptr.vmem [resolvable:$true] %s272_s28 }
   0x8   :  { %v51_v8 = vperm.slane %v43_v6, 0  ;;  %236 = vmatpush.bf16.msra.mxu2 %v353_v9  ;;  %v45_v44 = vld [vmem:[%s508_s4] sm:$0x1] }
   0x9   :  { %300 = vmatmul.msk.bf16.vlgmr.msra.gmra.mxu0 %vm33_vm0, %v342_v4  ;;  %v46_v52 = vunpack.c.l.bf16 %v45_v44 }
   0xa   :  { %309 = vmatmul.msk.bf16.vlgmr.msra.gmra.mxu1 %vm33_vm0, %v342_v4 }
   0xb   :  { %v91_v55 = vperm.slane %v46_v52, 0 }
   0xc   :  { %237 = vmatpush.bf16.msra.mxu2 %v352_v13 }
  0x10   :  { %238 = vmatpush.bf16.msra.mxu2 %v351_v16  ;;  %v169_v16 = vld [vmem:[#allocation2] sm:$0xff] }
  0x14   :  { %239 = vmatpush.bf16.msra.mxu2 %v350_v21  ;;  %v170_v21 = vld [vmem:[#allocation2 + $0x8] sm:$0xff] }
  0x18   :  { %240 = vmatpush.bf16.msra.mxu2 %v349_v24 }
  0x1c   :  { %241 = vmatpush.bf16.msra.mxu2 %v348_v28 }
  0x20   :  { %242 = vmatpush.bf16.msra.mxu2 %v347_v30 }
  0x86   :  { %v82_v10 = vpop.f32.mrf.mxu0 }
  0x87   :  { %v83_v11 = vadd.f32 %v82_v10, %v51_v8  ;;  %v113_v45 = vpop.f32.mrf.mxu1 }
  0x88   :  { %v114_v63 = vadd.f32 %v113_v45, %v91_v55 }
  0x89   :  { %v469_v12 = vpack.c.bf16 %v83_v11, %v83_v11 }
  0x8a   :  { %v160_v5 = vpack.c.bf16 %v114_v63, %v114_v63 }
  0x8b   :  { %v120_v14 = vxor.u32 2147516416, %v469_v12  ;;  %v152_v57 = vunpack.c.l.bf16 %v469_v12 }
  0x8c   :  { %v164_v9 = vunpack.c.l.bf16 %v160_v5 }
  0x8d   :  { %v122_v15 = vunpack.c.l.bf16 %v120_v14 }
  0x8e   :  { %v84_v17 = vpop.f32.mrf.mxu0 }
  0x8f   :  { %v124_v18 = vmul.f32 1.442695, %v122_v15  ;;  %v85_v19 = vadd.f32 %v84_v17, %v51_v8  ;;  %v115_v60 = vpop.f32.mrf.mxu1 }
  0x90   :  { %v116_v1 = vadd.f32 %v115_v60, %v91_v55 }
  0x91   :  { %360 = vpow2.f32 %v124_v18  ;;  %v119_v20 = vpack.c.bf16 %v85_v19, %v85_v19  ;;  %v258_v18 = vld [vmem:[%s510_s6] sm:$0x1]  ;;  %s274_s6 = sshll.u32 %s511_s7, 4  ;;  %s275_s6 = int_to_ptr.hbm [resolvable:$true] %s274_s6 }
  0x92   :  { %v161_v7 = vpack.c.bf16 %v116_v1, %v116_v1 }
  0x93   :  { %v121_v22 = vxor.u32 2147516416, %v119_v20  ;;  %v153_v3 = vunpack.c.l.bf16 %v119_v20  ;;  %v259_v20 = vunpack.c.l.bf16 %v258_v18 }
  0x94   :  { %v165_v11 = vunpack.c.l.bf16 %v161_v7 }
  0x95   :  { %v123_v23 = vunpack.c.l.bf16 %v121_v22  ;;  %v260_v22 = vperm.slane %v259_v20, 0 }
  0x97   :  { %v361_v25 = vpop.eup %360  ;;  %v126_v26 = vmul.f32 1.442695, %v123_v23 }
  0x98   :  { %v128_v27 = vpack.c.bf16 %v361_v25, %v361_v25 }
  0x99   :  { %362 = vpow2.f32 %v126_v26 }
  0x9a   :  { %v130_v29 = vunpack.c.l.bf16 %v128_v27 }
  0x9c   :  { %v132_v31 = vadd.f32 1.0, %v130_v29 }
  0x9e   :  { %v134_v32 = vpack.c.bf16 %v132_v31, %v132_v31 }
  0x9f   :  { %v363_v33 = vpop.eup %362 }
  0xa0   :  { %v138_v34 = vunpack.c.h.bf16 %v134_v32  ;;  %v139_v35 = vunpack.c.l.bf16 %v134_v32  ;;  %v129_v36 = vpack.c.bf16 %v363_v33, %v363_v33 }
  0xa2   :  { %364 = vrcp.f32 %v138_v34  ;;  %v131_v37 = vunpack.c.l.bf16 %v129_v36 }
  0xa3   :  { %366 = vrcp.f32 %v139_v35 }
  0xa4   :  { %v133_v39 = vadd.f32 1.0, %v131_v37 }
  0xa6   :  { %v135_v43 = vpack.c.bf16 %v133_v39, %v133_v39 }
  0xa8   :  { %v365_v46 = vpop.eup %364  ;;  %v145_v47 = vunpack.c.h.bf16 %v135_v43  ;;  %v146_v48 = vunpack.c.l.bf16 %v135_v43 }
  0xa9   :  { %v367_v49 = vpop.eup %366  ;;  %v141_v50 = vmul.f32 %v365_v46, %v136_v41 }
  0xaa   :  { %v143_v51 = vmul.f32 %v367_v49, %v137_v42  ;;  %368 = vrcp.f32 %v145_v47 }
  0xab   :  { %370 = vrcp.f32 %v146_v48 }
  0xac   :  { %v144_v53 = vpack.c.bf16 %v141_v50, %v143_v51 }
  0xae   :  { %v154_v54 = vunpack.c.l.bf16 %v144_v53 }
  0xb0   :  { %v369_v56 = vpop.eup %368  ;;  %v156_v61 = vmul.f32 %v154_v54, %v152_v57 }
  0xb1   :  { %v371_v58 = vpop.eup %370  ;;  %v148_v59 = vmul.f32 %v369_v56, %v136_v41 }
  0xb2   :  { %v150_v62 = vmul.f32 %v371_v58, %v137_v42  ;;  %v158_v2 = vpack.c.bf16 %v156_v61, %v156_v61 }
  0xb4   :  { %v151_v0 = vpack.c.bf16 %v148_v59, %v150_v62  ;;  %v162_v10 = vunpack.c.l.bf16 %v158_v2 }
  0xb6   :  { %v155_v4 = vunpack.c.l.bf16 %v151_v0  ;;  %v166_v12 = vmul.f32 %v164_v9, %v162_v10 }
  0xb8   :  { %v157_v6 = vmul.f32 %v155_v4, %v153_v3 }
  0xba   :  { %v159_v8 = vpack.c.bf16 %v157_v6, %v157_v6 }
  0xbc   :  { %v163_v13 = vunpack.c.l.bf16 %v159_v8 }
  0xbe   :  { %v167_v14 = vmul.f32 %v165_v11, %v163_v13 }
  0xc0   :  { %v168_v15 = vpack.c.bf16 %v167_v14, %v166_v12 }
  0xc2   :  { %243 = vmatmul.bf16.vlgmr.msra.gmra.mxu2 %v168_v15 }
 0x145   :  { %v244_v17 = vpop.f32.mrf.mxu2 }
 0x146   :  { %v249_v19 = vadd.f32 %v244_v17, %v169_v16 }
 0x148   :  { %251 = vst.msk [vmem:[#allocation2] sm:$0xff] %vm33_vm0, %v249_v19 }
 0x14d   :  { %v246_v23 = vpop.f32.mrf.mxu2 }
 0x14e   :  { %v250_v24 = vadd.f32 %v246_v23, %v170_v21 }
 0x14f   :  { %v256_v25 = vld [vmem:[#allocation2] sm:$0xff] }
 0x150   :  { %252 = vst.msk [vmem:[#allocation2 + $0x8] sm:$0xff] %vm33_vm0, %v250_v24  ;;  %v261_v26 = vadd.f32 %v260_v22, %v256_v25 }
 0x152   :  { %v263_v27 = vpack.c.bf16 %v261_v26, %v261_v26 }
 0x154   :  { %266 = vst.msk [vmem:[#allocation3] sm:$0xf] %vm265_vm1, %v263_v27 }
 0x157   :  { %v257_v28 = vld [vmem:[#allocation2 + $0x8] sm:$0xff] }
 0x158   :  { %v262_v29 = vadd.f32 %v260_v22, %v257_v28 }
 0x15a   :  { %v264_v30 = vpack.c.bf16 %v262_v29, %v262_v29 }
 0x15c   :  { %267 = vst.msk [vmem:[#allocation3 + $0x4] sm:$0xf] %vm265_vm1, %v264_v30 }
 0x15d   :  { %280 = dma.vmem_to_hbm [thread:$0]  %s273_s28, 128, %s275_s6, [#allocation4], %s401_s8, %s401_s8, %s402_s9  }
 0x15e   :  { %396 = dma.done.wait [#allocation4], 128  }
 0x15f   :  { %397 = vsyncadd [#allocation4], 4294967168 }
 0x160   :  { %285 = vsyncpa [#allocation4], 1 }

</bundles_post_ra>
